<compile_context>
chip_gen: v5e
topology: v5e:2x2
jax: 0.10.0
libtpu: 0.0.40
codegen_flags: <defaults>
</compile_context>

<pallas_src>
import jax
import jax.numpy as jnp
from jax.experimental import pallas as pl
from jax.experimental.pallas import tpu as pltpu


# Below this many MACs a pallas_call is pure launch/DMA overhead.
_PALLAS_MIN_MACS = 1 << 20


def _round_up(x, m):
    return ((x + m - 1) // m) * m


def _padded_slab_bytes(rows, cols, itemsize):
    """VMEM bytes of one 2-D slab after Mosaic's (sublane, 128-lane) padding.

    Sub-32-bit dtypes pack along sublanes (f32 -> 8-row tiles, bf16 -> 16,
    int8 -> 32)."""
    sublane = 8 * (4 // itemsize) if itemsize in (1, 2, 4) else 8
    return _round_up(rows, sublane) * _round_up(cols, 128) * itemsize


def _vmem_budget_bytes():
    """Generation-aware cap on the double-buffered VMEM working set."""
    try:
        cap = int(pltpu.get_tpu_info().vmem_capacity_bytes)
    except Exception:
        cap = 64 << 20  # be conservative: assume v7x-class 64 MiB per TC
    if cap <= (64 << 20):
        return 24 << 20  # v7x: leave headroom under the 64 MiB physical ceiling
    return 32 << 20      # v5e/v6e: 128 MiB physical; scoped limit raised to this


def _pick_batch_tile(B, per_batch_bytes, budget_bytes):
    """Largest batch tile whose double-buffered padded working set fits."""
    cap = max(1, budget_bytes // (2 * per_batch_bytes))  # 2x: pipeline buffers
    bt = min(B, cap)
    # v7x has 2 TensorCores: keep >= 2 grid steps along the 'parallel' batch
    # axis when possible (costs only ~0.35 us extra on single-TC chips).
    if B >= 2:
        bt = min(bt, -(-B // 2))
    return bt


def _bmm_tn_kernel(x3_ref, x4_ref, out_ref):
    # x3_ref: (Bt, K, Mp), x4_ref: (Bt, K, Np), out_ref: (Bt, Mp, Np)
    # out[b] = x3[b]^T @ x4[b]; contraction over K, the sublane axis of both
    # operands, which the MXU consumes natively as a transposed-LHS matmul.
    out_ref[...] = jnp.einsum(
        "bkm,bkn->bmn",
        x3_ref[...],
        x4_ref[...],
        preferred_element_type=jnp.float32,
    ).astype(out_ref.dtype)


def model_forward(x1, x2, x3, x4, x5, *, force_pallas=None, allow_bf16=False):
    """Mirrors Model.forward: only x3/x4 reach the return value."""
    # v1..v5 (permutes + bmm of x1/x2) are dead code w.r.t. the return value in
    # the PyTorch module and are intentionally not computed.
    del x1, x2, x5

    B, K, M = x3.shape
    Bb, Kb, N = x4.shape
    assert B == Bb and K == Kb, "inner dims of x3^T @ x4 must match"

    if force_pallas is None:
        use_pallas = (B * K * M * N) >= _PALLAS_MIN_MACS
    else:
        use_pallas = force_pallas
    if not use_pallas:
        # Tiny problem: the single fused XLA op is strictly faster than any
        # kernel launch.
        return jnp.einsum("bkm,bkn->bmn", x3, x4)

    out_dtype = x3.dtype
    compute_dtype = jnp.bfloat16 if allow_bf16 else x3.dtype

    # Lane/sublane-dense output: pad M to a multiple of 8 (sublanes) and N to a
    # multiple of 128 (lanes) so output stores are unmasked, full-lane vst.
    Mp = _round_up(M, 8)
    Np = _round_up(N, 128)
    x3c = x3.astype(compute_dtype)
    x4c = x4.astype(compute_dtype)
    if Mp != M:
        x3c = jnp.pad(x3c, ((0, 0), (0, 0), (0, Mp - M)))
    if Np != N:
        x4c = jnp.pad(x4c, ((0, 0), (0, 0), (0, Np - N)))

    in_itemsize = jnp.dtype(compute_dtype).itemsize
    out_itemsize = jnp.dtype(out_dtype).itemsize
    per_batch = (
        _padded_slab_bytes(K, Mp, in_itemsize)
        + _padded_slab_bytes(K, Np, in_itemsize)
        + _padded_slab_bytes(Mp, Np, out_itemsize)
    )

    budget = _vmem_budget_bytes()
    Bt = _pick_batch_tile(B, per_batch, budget)
    grid = (pl.cdiv(B, Bt),)  # partial last batch block is fine (not a lane/sublane dim)

    # Scoped VMEM limit sized to the actual double-buffered working set.
    vmem_limit = int(max(2 * per_batch * Bt + (2 << 20), 16 << 20))

    # TODO(synk): when grid collapses to a single step, pipeline_mode=pl.Buffered(1)
    # would drop the unused second buffer; kept default here for lowering safety
    # (the budget already accounts for double-buffering).

    cost = pl.CostEstimate(
        flops=2 * B * K * Mp * Np,
        transcendentals=0,
        bytes_accessed=(B * K * Mp + B * K * Np) * in_itemsize
        + B * Mp * Np * out_itemsize,
    )

    out = pl.pallas_call(
        _bmm_tn_kernel,
        out_shape=jax.ShapeDtypeStruct((B, Mp, Np), out_dtype),
        grid_spec=pltpu.PrefetchScalarGridSpec(
            num_scalar_prefetch=0,
            grid=grid,
            in_specs=[
                pl.BlockSpec((Bt, K, Mp), lambda b: (b, 0, 0)),
                pl.BlockSpec((Bt, K, Np), lambda b: (b, 0, 0)),
            ],
            out_specs=pl.BlockSpec((Bt, Mp, Np), lambda b: (b, 0, 0)),
        ),
        compiler_params=pltpu.CompilerParams(
            dimension_semantics=("parallel",),  # shards batch tiles across TCs
            vmem_limit_bytes=vmem_limit,
        ),
        cost_estimate=cost,
    )(x3c, x4c)

    if Mp != M or Np != N:
        out = out[:, :M, :N]
    return out


if __name__ == "__main__":
    key = jax.random.PRNGKey(0)
    k1, k2, k3, k4, k5 = jax.random.split(key, 5)

    # Shapes consistent with the module's forward: the final matmul requires
    # x3: (B, K, M) and x4: (B, K, N) so that x3^T @ x4 is well-defined.
    x1 = jax.random.normal(k1, (1, 1024, 64), dtype=jnp.float32)  # dead code
    x2 = jax.random.normal(k2, (1, 64, 10), dtype=jnp.float32)    # dead code
    x3 = jax.random.normal(k3, (1, 10, 20), dtype=jnp.float32)
    x4 = jax.random.normal(k4, (1, 10, 32), dtype=jnp.float32)
    x5 = jax.random.normal(k5, (1,), dtype=jnp.float32)           # unused

    ref = jnp.einsum("bkm,bkn->bmn", x3, x4)

    # 1) Module-shape call: auto-dispatches to the fused XLA einsum (tiny case).
    out_small = jax.block_until_ready(model_forward(x1, x2, x3, x4, x5))
    assert out_small.shape == ref.shape == (1, 20, 32)
    assert jnp.allclose(out_small, ref, atol=1e-5, rtol=1e-5)

    # 2) Exercise the Pallas kernel itself at the module's shape (forced path;
    #    also exercises the M->8 / N->128 lane-dense padding + slice-back).
    out_pallas = jax.block_until_ready(
        model_forward(x1, x2, x3, x4, x5, force_pallas=True)
    )
    assert out_pallas.shape == (1, 20, 32)
    assert jnp.allclose(out_pallas, ref, atol=1e-5, rtol=1e-5)

    # 3) Exercise a multi-step grid (batch tiling across 2 grid steps) at a
    #    still-small batched shape.
    kb3, kb4 = jax.random.split(jax.random.PRNGKey(1), 2)
    B, K, M, N = 8, 32, 40, 96
    x3b = jax.random.normal(kb3, (B, K, M), dtype=jnp.float32)
    x4b = jax.random.normal(kb4, (B, K, N), dtype=jnp.float32)
    out_b = jax.block_until_ready(
        model_forward(x1, x2, x3b, x4b, x5, force_pallas=True)
    )
    ref_b = jnp.einsum("bkm,bkn->bmn", x3b, x4b)
    assert out_b.shape == (B, M, N)
    assert jnp.allclose(out_b, ref_b, atol=1e-4, rtol=1e-4)

    print("KERNEL_OK")
</pallas_src>

<mosaic_0001>
module attributes {stable_mosaic.version = 11 : i64} {
  func.func @_bmm_tn_kernel(%arg0: i32, %arg1: memref<1x10x24xf32, #tpu.memory_space<vmem>>, %arg2: memref<1x10x128xf32, #tpu.memory_space<vmem>>, %arg3: memref<1x24x128xf32, #tpu.memory_space<vmem>>) attributes {dimension_semantics = [#tpu.dimension_semantics<parallel>], iteration_bounds = array<i64: 1>, scalar_prefetch = 0 : i64, scratch_operands = 0 : i64, tpu.core_type = #tpu.core_type<tc>, window_params = [{transform_indices = @transform_0, window_bounds = array<i64: 1, 10, 24>}, {transform_indices = @transform_1, window_bounds = array<i64: 1, 10, 128>}, {transform_indices = @transform_2, window_bounds = array<i64: 1, 24, 128>}]} {
    %c0 = arith.constant 0 : index
    %c0_0 = arith.constant 0 : index
    %c0_1 = arith.constant 0 : index
    %0 = vector.load %arg1[%c0, %c0_0, %c0_1] : memref<1x10x24xf32, #tpu.memory_space<vmem>>, vector<1x10x24xf32>
    %c0_2 = arith.constant 0 : index
    %c0_3 = arith.constant 0 : index
    %c0_4 = arith.constant 0 : index
    %1 = vector.load %arg2[%c0_2, %c0_3, %c0_4] : memref<1x10x128xf32, #tpu.memory_space<vmem>>, vector<1x10x128xf32>
    "tpu.trace_start"() <{level = 10 : i32, message = "bkm,bkn->bmn"}> : () -> ()
    %cst = arith.constant dense<0.000000e+00> : vector<1x24x128xf32>
    %2 = tpu.matmul %0, %1, %cst {dimension_numbers = #tpu.dot_dimension_numbers<[1], [1], [2], [2], [0, 0, 0, 2, 1, 2], [0], [0]>} : vector<1x10x24xf32>, vector<1x10x128xf32>, vector<1x24x128xf32> -> vector<1x24x128xf32>
    "tpu.trace_stop"() : () -> ()
    %c0_5 = arith.constant 0 : index
    %c0_6 = arith.constant 0 : index
    %c0_7 = arith.constant 0 : index
    %3 = vector.load %arg3[%c0_5, %c0_6, %c0_7] : memref<1x24x128xf32, #tpu.memory_space<vmem>>, vector<1x24x128xf32>
    tpu.vector_store %arg3[%c0_5, %c0_6, %c0_7], %2 {strides = array<i32>} : memref<1x24x128xf32, #tpu.memory_space<vmem>>, vector<1x24x128xf32>,
    return
  }
  func.func @transform_0(%arg0: i32) -> (i32, i32, i32) {
    %c0_i32 = arith.constant 0 : i32
    %c0_i32_0 = arith.constant 0 : i32
    %c0_i32_1 = arith.constant 0 : i32
    return %arg0, %c0_i32, %c0_i32_0 : i32, i32, i32
  }
  func.func @transform_1(%arg0: i32) -> (i32, i32, i32) {
    %c0_i32 = arith.constant 0 : i32
    %c0_i32_0 = arith.constant 0 : i32
    %c0_i32_1 = arith.constant 0 : i32
    return %arg0, %c0_i32, %c0_i32_0 : i32, i32, i32
  }
  func.func @transform_2(%arg0: i32) -> (i32, i32, i32) {
    %c0_i32 = arith.constant 0 : i32
    %c0_i32_0 = arith.constant 0 : i32
    %c0_i32_1 = arith.constant 0 : i32
    return %arg0, %c0_i32, %c0_i32_0 : i32, i32, i32
  }
}

</mosaic_0001>

<bundles_post_ra>
// kernel: tpu_custom_call.1
= control target key start
LH: loop header
LB: loop body
LE: loop exit
PB: predicated region body
PF: predicated region fallthrough
CT: control target
= control target key end

     0   :  { %vm58_vm0 = vcmask 1041408   ;;  %s180_s0 = inlined_call_operand.vmem [shape: f32[1,10,24], index: 0, kind: input, shape index: {}]   ;;  %s181_s1 = inlined_call_operand.vmem [shape: f32[1,10,128], index: 1, kind: input, shape index: {}]   ;;  %s182_s2 = inlined_call_operand.hbm [shape: f32[1,24,128], index: 2, kind: output, shape index: {}]  }
   0x1   :  { %v12_v0 = vld [vmem:[%s180_s0] sm:$0xff]  ;;  %v15_v1 = vld [vmem:[%s181_s1 + $0x8] sm:$0x3] }
   0x2   :  { %16 = vxpose.xlu0.b32.start [1/2] (short) (narrow) %v12_v0, 24  ;;  %v14_v2 = vld [vmem:[%s181_s1] sm:$0xff] }
   0x3   :  { %7 = vsyncpa [#allocation3], 0  ;;  %109 = vmatpush.msk.msra.mxu0 %vm58_vm0, %v15_v1  ;;  %113 = vmatpush.msk.msra.mxu1 %vm58_vm0, %v15_v1  ;;  %v13_v3 = vld [vmem:[%s180_s0 + $0x8] sm:$0x3]  ;;  %vm48_vm1 = vcmask 80896   ;;  %s147_s1 = smov [#allocation2]  }
   0x4   :  { %114 = vmatpush.msk.msra.mxu2 %vm58_vm0, %v15_v1  ;;  %s95_s17 = sshll.u32 %s147_s1, 4  ;;  %s97_s20 = sshll.u32 %s182_s2, 4  ;;  %s96_s17 = int_to_ptr.vmem [resolvable:$true] %s95_s17  ;;  %s98_s20 = int_to_ptr.hbm [resolvable:$true] %s97_s20 }
   0x5   :  { %77 = vmatpush.msra.mxu0 %v14_v2  ;;  %115 = vmatpush.msra.mxu1 %v14_v2  ;;  %s148_s0 = smov 128   ;;  %s149_s21 = smov 8  }
   0x6   :  { %116 = vmatpush.msra.mxu2 %v14_v2 }
   0xa   :  { %17 = vxpose.xlu0.b32.end [2/2] (short) (narrow) %v13_v3, 24 }
  0xa6   :  { %v32_v4 = vpop.trf.xlu0 }
  0xa7   :  { %110 = vmatmul.msk.f32.vlgmr.msra.gmra.mxu0 %vm48_vm1, %v32_v4 }
  0xae   :  { %v33_v5 = vpop.trf.xlu0 }
  0xaf   :  { %111 = vmatmul.msk.f32.vlgmr.msra.gmra.mxu1 %vm48_vm1, %v33_v5 }
  0xb6   :  { %v34_v6 = vpop.trf.xlu0 }
  0xb7   :  { %112 = vmatmul.msk.f32.vlgmr.msra.gmra.mxu2 %vm48_vm1, %v34_v6 }
 0x124   :  { %v79_v7 = vpop.f32.mrf.mxu0 }
 0x125   :  { %88 = vst [vmem:[#allocation2] sm:$0xff] %v79_v7 }
 0x12c   :  { %v82_v8 = vpop.f32.mrf.mxu1 }
 0x12d   :  { %89 = vst [vmem:[#allocation2 + $0x8] sm:$0xff] %v82_v8 }
 0x13a   :  { %v85_v9 = vpop.f32.mrf.mxu2 }
 0x13b   :  { %90 = vst [vmem:[#allocation2 + $0x10] sm:$0xff] %v85_v9 }
 0x13c   :  { %103 = dma.vmem_to_hbm [thread:$0]  %s96_s17, 384, %s98_s20, [#allocation3], %s148_s0, %s148_s0, %s149_s21  }
 0x13d   :  { %145 = dma.done.wait [#allocation3], 384  }
 0x13e   :  { %146 = vsyncadd [#allocation3], 4294966912 }
 0x13f   :  { %108 = vsyncpa [#allocation3], 1 }

</bundles_post_ra>
